<compile_context>
chip_gen: v6e
topology: v6e:2x2x1
jax: 0.10.0
libtpu: 0.0.40
codegen_flags: <defaults>
</compile_context>

<pallas_src>
import jax
import jax.numpy as jnp
from jax.experimental import pallas as pl
from jax.experimental.pallas import tpu as pltpu


def _round_up(v, m):
    return (v + m - 1) // m * m


def _tpu_vmem_bytes():
    """Physical per-core VMEM in bytes; conservative 64 MiB fallback (v7x)."""
    try:
        info = pltpu.get_tpu_info()
        v = getattr(info, "vmem_capacity_bytes", None)
        if isinstance(v, int) and v > 0:
            return v
    except Exception:
        pass
    return 64 << 20


def _num_tensorcores():
    """TensorCores per chip; 1 is the safe fallback (v5e/v6e)."""
    try:
        d = jax.devices()[0]
        for attr in ("num_cores", "core_count"):
            v = getattr(d, attr, None)
            if isinstance(v, int) and v > 0:
                return v
        if "v7" in str(getattr(d, "device_kind", "")).lower():
            return 2
    except Exception:
        pass
    return 1


def _estimate_vmem_bytes(bb, np_, h1p, h2p, io_bytes):
    """Rough VMEM working-set estimate for one grid step (bytes)."""
    stream = 2 * bb * np_ * io_bytes * 2                    # x-in + out, double-buffered
    weights = (np_ * h1p + h1p * h2p) * 2                   # bf16 w1, w2 (single copy)
    weights += (h1p + h2p + h2p * 128) * 4                  # f32 b1, b2, replicated w3
    temps = bb * (h1p + h2p) * 4                            # f32 h1, h2
    temps += bb * np_ * 2 + bb * 128 * 4 + bb * np_ * 4     # bf16 x, s, gated product
    return stream + weights + temps


def _mlp_gate_kernel(x_ref, w1_ref, b1_ref, w2_ref, b2_ref, w3_ref, b3_ref, o_ref):
    x = x_ref[...]                                    # (tb, Np), f32
    xb = x.astype(jnp.bfloat16)

    # fc1 + relu   (MXU: bf16 x bf16 -> f32 accumulate)
    h1 = jnp.dot(xb, w1_ref[...], preferred_element_type=jnp.float32) + b1_ref[...]
    h1 = jnp.maximum(h1, 0.0)                         # (tb, H1p) f32

    # fc2 + relu
    h2 = jnp.dot(h1.astype(jnp.bfloat16), w2_ref[...],
                 preferred_element_type=jnp.float32) + b2_ref[...]
    h2 = jnp.maximum(h2, 0.0)                         # (tb, H2p) f32

    # fc3 (out_features == 1) on the MXU against a lane-replicated (H2p, 128) f32
    # weight: no XLU cross-lane reduce, and the result arrives already broadcast
    # across 128 lanes, so gating is plain vreg reuse per 128-lane chunk of N.
    s = jnp.dot(h2, w3_ref[...], preferred_element_type=jnp.float32) + b3_ref[0]  # (tb, 128)
    reps = x.shape[-1] // 128
    if reps > 1:
        s = jnp.tile(s, (1, reps))                    # (tb, Np)

    # Gate the original input, like the PyTorch module.
    o_ref[...] = (s * x).astype(o_ref.dtype)


def prepare_params(w1, b1, w2, b2, w3, b3):
    """PyTorch nn.Linear layout (w: (out, in), b: (out,)) -> kernel-ready arrays:
    transposed to (in, out); input/hidden dims zero-padded to multiples of 128;
    fc1/fc2 weights cast to bf16; fc3 weight lane-replicated to (H2p, 128) f32;
    fc3 bias as a (1,)-shaped f32 scalar for SMEM."""
    h1, n = w1.shape
    h2 = w2.shape[0]
    np_ = _round_up(n, 128)
    h1p = _round_up(h1, 128)
    h2p = _round_up(h2, 128)

    f32 = jnp.float32
    w1_t = jnp.zeros((np_, h1p), f32).at[:n, :h1].set(jnp.asarray(w1, f32).T)
    b1_p = jnp.zeros((1, h1p), f32).at[:, :h1].set(jnp.asarray(b1, f32)[None, :])
    w2_t = jnp.zeros((h1p, h2p), f32).at[:h1, :h2].set(jnp.asarray(w2, f32).T)
    b2_p = jnp.zeros((1, h2p), f32).at[:, :h2].set(jnp.asarray(b2, f32)[None, :])
    w3_col = jnp.zeros((h2p, 1), f32).at[:h2, :].set(jnp.asarray(w3, f32).reshape(h2, 1))
    w3_rep = jnp.tile(w3_col, (1, 128))               # every column == fc3 weight
    b3_s = jnp.asarray(b3, f32).reshape((1,))

    return dict(
        w1=w1_t.astype(jnp.bfloat16), b1=b1_p,
        w2=w2_t.astype(jnp.bfloat16), b2=b2_p,
        w3=w3_rep, b3=b3_s, n=n,
    )


def simple_number_based(x, params, *, block_b=1024):
    """x: (B, N). params: output of prepare_params()."""
    B, N = x.shape
    w1, b1 = params["w1"], params["b1"]
    w2, b2 = params["w2"], params["b2"]
    w3, b3 = params["w3"], params["b3"]
    Np, H1p = w1.shape
    H2p = w2.shape[1]
    assert params["n"] == N and N <= Np

    io_bytes = jnp.dtype(x.dtype).itemsize
    phys = _tpu_vmem_bytes()
    budget = max(24 << 20, phys - (8 << 20))
    num_cores = _num_tensorcores()

    # Batch tile: as large as reasonable, rounded to the sublane quantum.
    bb = min(_round_up(block_b, 8), _round_up(B, 8))
    # Multi-TensorCore chips (v7x): make sure each core sees >= 4 pipelined steps.
    if num_cores >= 2 and B > 512:
        target_steps = 4 * num_cores
        bb = min(bb, max(128, _round_up(pl.cdiv(B, target_steps), 8)))
    # Shrink the tile until the working set fits this generation's VMEM.
    while bb > 256 and int(_estimate_vmem_bytes(bb, Np, H1p, H2p, io_bytes) * 1.25) > budget:
        bb = max(256, _round_up(bb // 2, 8))
    bb = min(bb, _round_up(B, 8))

    Bp = _round_up(B, bb)
    pad_b, pad_n = Bp - B, Np - N
    x_p = x if (pad_b == 0 and pad_n == 0) else jnp.pad(x, ((0, pad_b), (0, pad_n)))

    est = _estimate_vmem_bytes(bb, Np, H1p, H2p, io_bytes)
    vmem_limit = int(min(phys * 0.9, max(32 << 20, est * 2)))

    grid = (Bp // bb,)
    # Whole-array resident VMEM operands: a single copy, no double-buffering.
    vmem_full = pl.BlockSpec(memory_space=pltpu.MemorySpace.VMEM)

    out = pl.pallas_call(
        _mlp_gate_kernel,
        out_shape=jax.ShapeDtypeStruct((Bp, Np), x.dtype),
        grid_spec=pltpu.PrefetchScalarGridSpec(
            num_scalar_prefetch=0,
            grid=grid,
            in_specs=[
                pl.BlockSpec((bb, Np), lambda i: (i, 0)),            # x tile (pipelined)
                vmem_full,                                            # w1 (bf16)
                vmem_full,                                            # b1 (f32)
                vmem_full,                                            # w2 (bf16)
                vmem_full,                                            # b2 (f32)
                vmem_full,                                            # w3 lane-replicated (f32)
                pl.BlockSpec(memory_space=pltpu.MemorySpace.SMEM),    # b3 scalar
            ],
            out_specs=pl.BlockSpec((bb, Np), lambda i: (i, 0)),
        ),
        compiler_params=pltpu.CompilerParams(
            dimension_semantics=("parallel",),
            vmem_limit_bytes=vmem_limit,
        ),
    )(x_p, w1, b1, w2, b2, w3, b3)

    if pad_b or pad_n:
        out = out[:B, :N]
    return out


def _reference_f32(x, w1, b1, w2, b2, w3, b3):
    h1 = jnp.maximum(x @ w1.T + b1, 0.0)
    h2 = jnp.maximum(h1 @ w2.T + b2, 0.0)
    s = h2 @ w3.T + b3
    return s * x


def _reference_bf16(x, w1, b1, w2, b2, w3, b3):
    """Same math as the kernel: bf16 matmul operands, f32 accumulation."""
    bf = jnp.bfloat16
    h1 = jnp.dot(x.astype(bf), w1.T.astype(bf), preferred_element_type=jnp.float32) + b1
    h1 = jnp.maximum(h1, 0.0)
    h2 = jnp.dot(h1.astype(bf), w2.T.astype(bf), preferred_element_type=jnp.float32) + b2
    h2 = jnp.maximum(h2, 0.0)
    s = h2 @ w3.T + b3
    return s * x


if __name__ == "__main__":
    # Small shapes consistent with the module: n=128 -> fc1: 128->192, fc2: 192->64, fc3: 64->1.
    N = 128
    H1 = int(N * 1.5)   # 192
    H2 = N // 2         # 64
    B = 16

    key = jax.random.PRNGKey(0)
    kx, k1, kb1, k2, kb2, k3, kb3 = jax.random.split(key, 7)

    x = jax.random.normal(kx, (B, N), dtype=jnp.float32)

    # PyTorch nn.Linear layout: weight (out_features, in_features), bias (out_features,)
    w1 = jax.random.normal(k1, (H1, N), dtype=jnp.float32) / jnp.sqrt(N)
    b1 = jax.random.normal(kb1, (H1,), dtype=jnp.float32) * 0.01
    w2 = jax.random.normal(k2, (H2, H1), dtype=jnp.float32) / jnp.sqrt(H1)
    b2 = jax.random.normal(kb2, (H2,), dtype=jnp.float32) * 0.01
    w3 = jax.random.normal(k3, (1, H2), dtype=jnp.float32) / jnp.sqrt(H2)
    b3 = jax.random.normal(kb3, (1,), dtype=jnp.float32) * 0.01

    params = prepare_params(w1, b1, w2, b2, w3, b3)
    out = simple_number_based(x, params, block_b=1024)
    out = jax.block_until_ready(out)
    assert out.shape == (B, N)

    # Apples-to-apples check against a bf16-operand / f32-accumulate reference.
    ref_bf16 = _reference_bf16(x, w1, b1, w2, b2, w3, b3)
    assert jnp.allclose(out, ref_bf16, atol=1e-2, rtol=1e-2), "mismatch vs bf16 reference"

    # Loose sanity check against the full-f32 PyTorch-equivalent math.
    ref_f32 = _reference_f32(x, w1, b1, w2, b2, w3, b3)
    assert jnp.allclose(out, ref_f32, atol=2e-1, rtol=1e-1), "mismatch vs f32 reference"

    print("KERNEL_OK")
</pallas_src>

<mosaic_0001>
module attributes {stable_mosaic.version = 11 : i64} {
  func.func @_mlp_gate_kernel(%arg0: i32, %arg1: memref<16x128xf32, #tpu.memory_space<vmem>>, %arg2: memref<128x256xbf16, #tpu.memory_space<vmem>>, %arg3: memref<1x256xf32, #tpu.memory_space<vmem>>, %arg4: memref<256x128xbf16, #tpu.memory_space<vmem>>, %arg5: memref<1x128xf32, #tpu.memory_space<vmem>>, %arg6: memref<128x128xf32, #tpu.memory_space<vmem>>, %arg7: memref<1xf32, #tpu.memory_space<smem>>, %arg8: memref<16x128xf32, #tpu.memory_space<vmem>>) attributes {dimension_semantics = [#tpu.dimension_semantics<parallel>], iteration_bounds = array<i64: 1>, scalar_prefetch = 0 : i64, scratch_operands = 0 : i64, tpu.core_type = #tpu.core_type<tc>, window_params = [{transform_indices = @transform_0, window_bounds = array<i64: 16, 128>}, {pipeline_mode = #tpu.pipeline_mode<synchronous>, transform_indices = @transform_1, window_bounds = array<i64: 128, 256>}, {pipeline_mode = #tpu.pipeline_mode<synchronous>, transform_indices = @transform_2, window_bounds = array<i64: 1, 256>}, {pipeline_mode = #tpu.pipeline_mode<synchronous>, transform_indices = @transform_3, window_bounds = array<i64: 256, 128>}, {pipeline_mode = #tpu.pipeline_mode<synchronous>, transform_indices = @transform_4, window_bounds = array<i64: 1, 128>}, {pipeline_mode = #tpu.pipeline_mode<synchronous>, transform_indices = @transform_5, window_bounds = array<i64: 128, 128>}, {transform_indices = @transform_6, window_bounds = array<i64: 1>}, {transform_indices = @transform_7, window_bounds = array<i64: 16, 128>}]} {
    %c0 = arith.constant 0 : index
    %c0_0 = arith.constant 0 : index
    %0 = vector.load %arg1[%c0, %c0_0] : memref<16x128xf32, #tpu.memory_space<vmem>>, vector<16x128xf32>
    %1 = arith.truncf %0 : vector<16x128xf32> to vector<16x128xbf16>
    %c0_1 = arith.constant 0 : index
    %c0_2 = arith.constant 0 : index
    %2 = vector.load %arg2[%c0_1, %c0_2] : memref<128x256xbf16, #tpu.memory_space<vmem>>, vector<128x256xbf16>
    %cst = arith.constant dense<0.000000e+00> : vector<16x256xf32>
    %3 = tpu.matmul %1, %2, %cst {dimension_numbers = #tpu.dot_dimension_numbers<[1], [0], [0], [1], [0, 0, 1, 1], [], []>} : vector<16x128xbf16>, vector<128x256xbf16>, vector<16x256xf32> -> vector<16x256xf32>
    %c0_3 = arith.constant 0 : index
    %c0_4 = arith.constant 0 : index
    %4 = vector.load %arg3[%c0_3, %c0_4] : memref<1x256xf32, #tpu.memory_space<vmem>>, vector<1x256xf32>
    %5 = vector.broadcast %4 : vector<1x256xf32> to vector<16x256xf32>
    %6 = arith.addf %3, %5 : vector<16x256xf32>
    %cst_5 = arith.constant 0.000000e+00 : f32
    %7 = vector.broadcast %cst_5 : f32 to vector<16x256xf32>
    %8 = arith.maximumf %6, %7 : vector<16x256xf32>
    %9 = arith.truncf %8 : vector<16x256xf32> to vector<16x256xbf16>
    %c0_6 = arith.constant 0 : index
    %c0_7 = arith.constant 0 : index
    %10 = vector.load %arg4[%c0_6, %c0_7] : memref<256x128xbf16, #tpu.memory_space<vmem>>, vector<256x128xbf16>
    %cst_8 = arith.constant dense<0.000000e+00> : vector<16x128xf32>
    %11 = tpu.matmul %9, %10, %cst_8 {dimension_numbers = #tpu.dot_dimension_numbers<[1], [0], [0], [1], [0, 0, 1, 1], [], []>} : vector<16x256xbf16>, vector<256x128xbf16>, vector<16x128xf32> -> vector<16x128xf32>
    %c0_9 = arith.constant 0 : index
    %c0_10 = arith.constant 0 : index
    %12 = vector.load %arg5[%c0_9, %c0_10] : memref<1x128xf32, #tpu.memory_space<vmem>>, vector<1x128xf32>
    %13 = vector.broadcast %12 : vector<1x128xf32> to vector<16x128xf32>
    %14 = arith.addf %11, %13 : vector<16x128xf32>
    %cst_11 = arith.constant 0.000000e+00 : f32
    %15 = vector.broadcast %cst_11 : f32 to vector<16x128xf32>
    %16 = arith.maximumf %14, %15 : vector<16x128xf32>
    %c0_12 = arith.constant 0 : index
    %c0_13 = arith.constant 0 : index
    %17 = vector.load %arg6[%c0_12, %c0_13] : memref<128x128xf32, #tpu.memory_space<vmem>>, vector<128x128xf32>
    %cst_14 = arith.constant dense<0.000000e+00> : vector<16x128xf32>
    %18 = tpu.matmul %16, %17, %cst_14 {dimension_numbers = #tpu.dot_dimension_numbers<[1], [0], [0], [1], [0, 0, 1, 1], [], []>} : vector<16x128xf32>, vector<128x128xf32>, vector<16x128xf32> -> vector<16x128xf32>
    %c0_15 = arith.constant 0 : index
    %19 = memref.load %arg7[%c0_15] : memref<1xf32, #tpu.memory_space<smem>>
    %20 = vector.broadcast %19 : f32 to vector<16x128xf32>
    %21 = arith.addf %18, %20 : vector<16x128xf32>
    %22 = arith.mulf %21, %0 : vector<16x128xf32>
    %c0_16 = arith.constant 0 : index
    %c0_17 = arith.constant 0 : index
    %23 = vector.load %arg8[%c0_16, %c0_17] : memref<16x128xf32, #tpu.memory_space<vmem>>, vector<16x128xf32>
    tpu.vector_store %arg8[%c0_16, %c0_17], %22 {strides = array<i32>} : memref<16x128xf32, #tpu.memory_space<vmem>>, vector<16x128xf32>,
    return
  }
  func.func @transform_0(%arg0: i32) -> (i32, i32) {
    %c0_i32 = arith.constant 0 : i32
    %c0_i32_0 = arith.constant 0 : i32
    return %arg0, %c0_i32 : i32, i32
  }
  func.func @transform_1(%arg0: i32) -> (i32, i32) {
    %c0_i32 = arith.constant 0 : i32
    %c0_i32_0 = arith.constant 0 : i32
    %c0_i32_1 = arith.constant 0 : i32
    return %c0_i32, %c0_i32_0 : i32, i32
  }
  func.func @transform_2(%arg0: i32) -> (i32, i32) {
    %c0_i32 = arith.constant 0 : i32
    %c0_i32_0 = arith.constant 0 : i32
    %c0_i32_1 = arith.constant 0 : i32
    return %c0_i32, %c0_i32_0 : i32, i32
  }
  func.func @transform_3(%arg0: i32) -> (i32, i32) {
    %c0_i32 = arith.constant 0 : i32
    %c0_i32_0 = arith.constant 0 : i32
    %c0_i32_1 = arith.constant 0 : i32
    return %c0_i32, %c0_i32_0 : i32, i32
  }
  func.func @transform_4(%arg0: i32) -> (i32, i32) {
    %c0_i32 = arith.constant 0 : i32
    %c0_i32_0 = arith.constant 0 : i32
    %c0_i32_1 = arith.constant 0 : i32
    return %c0_i32, %c0_i32_0 : i32, i32
  }
  func.func @transform_5(%arg0: i32) -> (i32, i32) {
    %c0_i32 = arith.constant 0 : i32
    %c0_i32_0 = arith.constant 0 : i32
    %c0_i32_1 = arith.constant 0 : i32
    return %c0_i32, %c0_i32_0 : i32, i32
  }
  func.func @transform_6(%arg0: i32) -> i32 {
    %c0_i32 = arith.constant 0 : i32
    %c0_i32_0 = arith.constant 0 : i32
    return %c0_i32 : i32
  }
  func.func @transform_7(%arg0: i32) -> (i32, i32) {
    %c0_i32 = arith.constant 0 : i32
    %c0_i32_0 = arith.constant 0 : i32
    return %arg0, %c0_i32 : i32, i32
  }
}

</mosaic_0001>

<bundles_post_ra>
// kernel: tpu_custom_call.1
= control target key start
LH: loop header
LB: loop body
LE: loop exit
PB: predicated region body
PF: predicated region fallthrough
CT: control target
= control target key end

     0   :  { %13 = vsyncpa [#allocation4], 0  ;;  %s898_s0 = inlined_call_operand.hbm [shape: f32[16,128], index: 0, kind: input, shape index: {}]   ;;  %s899_s1 = inlined_call_operand.hbm [shape: bf16[128,256], index: 1, kind: input, shape index: {}]   ;;  %s900_s2 = inlined_call_operand.vmem [shape: f32[1,256], index: 2, kind: input, shape index: {}]   ;;  %s901_s3 = inlined_call_operand.hbm [shape: bf16[256,128], index: 3, kind: input, shape index: {}]   ;;  %s902_s4 = inlined_call_operand.vmem [shape: f32[1,128], index: 4, kind: input, shape index: {}]   ;;  %s903_s5 = inlined_call_operand.hbm [shape: f32[128,128], index: 5, kind: input, shape index: {}]   ;;  %s904_s6 = inlined_call_operand.<no memory space> [shape: f32[1], index: 6, kind: input, shape index: {}]   ;;  %s905_s7 = inlined_call_operand.hbm [shape: f32[16,128], index: 7, kind: output, shape index: {}]  }
   0x1   :  { %14 = vsyncpa [#allocation7], 0 }
   0x2   :  { %15 = vsyncpa [#allocation10], 0 }
   0x3   :  { %16 = vsyncpa [#allocation5], 0  ;;  %s804_s24 = smov [#allocation6]   ;;  %s805_s26 = smov [#allocation3]  }
   0x4   :  { %s34_s25 = sshll.u32 %s804_s24, 4  ;;  %s22_s27 = sshll.u32 %s805_s26, 4  ;;  %s35_s25 = int_to_ptr.vmem [resolvable:$true] %s34_s25  ;;  %s23_s27 = int_to_ptr.vmem [resolvable:$true] %s22_s27 }
   0x5   :  { %s704_s28 = scalar_lea.vmem %s35_s25, 2048  ;;  %p709_p1 = scmp.lt.s32.totalorder %s35_s25, %s35_s25 }
   0x6   :  { %p705_p0 = scmp.ne.s32.totalorder %s35_s25, %s704_s28  ;;  %p710_p2 = scmp.lt.s32.totalorder %s704_s28, %s704_s28 }
   0x8   :  { %p711_p3 = por %p710_p2, %p709_p1 }
   0xa   :  { %p712_p4 = pnand %p711_p3, %p705_p0 }
   0xc   :  { %715 = shalt.err (!%p712_p4)
}
   0xd   :  { %s806_s29 = smov 128   ;;  %s807_s30 = smov 8  }
   0xe   :  { %40 = dma.hbm_to_vmem [thread:$0]  %s899_s1, 2048, %s35_s25, [#allocation7], %s806_s29, %s806_s29, %s807_s30  }
   0xf   :  { %s724_s10 = scalar_lea.vmem %s23_s27, 256  ;;  %p729_p6 = scmp.lt.s32.totalorder %s23_s27, %s23_s27 }
  0x10   :  { %p725_p5 = scmp.ne.s32.totalorder %s23_s27, %s724_s10  ;;  %p730_p7 = scmp.lt.s32.totalorder %s724_s10, %s724_s10 }
  0x12   :  { %p731_p8 = por %p730_p7, %p729_p6 }
  0x14   :  { %p732_p9 = pnand %p731_p8, %p725_p5 }
  0x16   :  { %735 = shalt.err (!%p732_p9)
}
  0x17   :  { %28 = dma.hbm_to_vmem [thread:$0]  %s898_s0, 256, %s23_s27, [#allocation4], %s806_s29, %s806_s29, %s807_s30  }
  0x18   :  { %s808_s13 = smov [#allocation8]  }
  0x19   :  { %s48_s14 = sshll.u32 %s808_s13, 4  ;;  %s49_s14 = int_to_ptr.vmem [resolvable:$true] %s48_s14 }
  0x1a   :  { %s744_s15 = scalar_lea.vmem %s49_s14, 2048  ;;  %p749_p11 = scmp.lt.s32.totalorder %s49_s14, %s49_s14 }
  0x1b   :  { %p745_p10 = scmp.ne.s32.totalorder %s49_s14, %s744_s15  ;;  %p750_p12 = scmp.lt.s32.totalorder %s744_s15, %s744_s15 }
  0x1d   :  { %p751_p13 = por %p750_p12, %p749_p11 }
  0x1f   :  { %p752_p0 = pnand %p751_p13, %p745_p10 }
  0x21   :  { %755 = shalt.err (!%p752_p0)
}
  0x22   :  { %s809_s1 = smov 64   ;;  %s810_s16 = smov 4  }
  0x23   :  { %54 = dma.hbm_to_vmem [thread:$0]  %s901_s3, 2048, %s49_s14, [#allocation7], %s809_s1, %s809_s1, %s810_s16  }
  0x24   :  { %s811_s19 = smov [#allocation9]  }
  0x25   :  { %s62_s20 = sshll.u32 %s811_s19, 4  ;;  %s63_s20 = int_to_ptr.vmem [resolvable:$true] %s62_s20 }
  0x26   :  { %s764_s0 = scalar_lea.vmem %s63_s20, 2048  ;;  %p769_p2 = scmp.lt.s32.totalorder %s63_s20, %s63_s20 }
  0x27   :  { %p765_p1 = scmp.ne.s32.totalorder %s63_s20, %s764_s0  ;;  %p770_p3 = scmp.lt.s32.totalorder %s764_s0, %s764_s0 }
  0x29   :  { %p771_p4 = por %p770_p3, %p769_p2 }
  0x2b   :  { %p772_p5 = pnand %p771_p4, %p765_p1 }
  0x2d   :  { %775 = shalt.err (!%p772_p5)
}
  0x2e   :  { %68 = dma.hbm_to_vmem [thread:$0]  %s903_s5, 2048, %s63_s20, [#allocation10], %s806_s29, %s806_s29, %s807_s30  }
  0x2f   :  { %796 = dma.done.wait [#allocation4], 256  }
  0x30   :  { %797 = vsyncadd [#allocation4], 4294967040 }
  0x31   :  { %798 = dma.done.wait [#allocation7], 4096  }
  0x32   :  { %799 = vsyncadd [#allocation7], 4294963200 }
  0x33   :  { %800 = dma.done.wait [#allocation10], 2048  }
  0x34   :  { %801 = vsyncadd [#allocation10], 4294965248  ;;  %v812_v0 = vmov 0   ;;  %v656_v1 = vld [vmem:[#allocation6 + $0x74] ss:$8 sps:$4 sm:$0xff]   ;;  %v684_v16 = vld [vmem:[#allocation8 + $0x68] sm:$0xff]   ;;  %v105_v46 = vlaneseq }
  0x35   :  { %227 = vmatprep.mubr.bf16.mxu0 %v812_v0  ;;  %v658_v2 = vld [vmem:[#allocation6 + $0x70] ss:$8 sps:$4 sm:$0xff]   ;;  %195 = vmatprep.subr.bf16.mxu0 %v656_v1  ;;  %v659_v3 = vld [vmem:[#allocation6 + $0x64] ss:$8 sps:$4 sm:$0xff]   ;;  %v661_v4 = vld [vmem:[#allocation6 + $0x60] ss:$8 sps:$4 sm:$0xff]  }
  0x36   :  { %196 = vmatpush1.bf16.msra.mxu0 %v658_v2  ;;  %v662_v5 = vld [vmem:[#allocation6 + $0x54] ss:$8 sps:$4 sm:$0xff]   ;;  %v664_v6 = vld [vmem:[#allocation6 + $0x50] ss:$8 sps:$4 sm:$0xff]   ;;  %v665_v7 = vld [vmem:[#allocation6 + $0x44] ss:$8 sps:$4 sm:$0xff]  }
  0x37   :  { %197 = vmatprep.subr.bf16.mxu0 %v659_v3  ;;  %v667_v8 = vld [vmem:[#allocation6 + $0x40] ss:$8 sps:$4 sm:$0xff]   ;;  %v668_v9 = vld [vmem:[#allocation6 + $0x34] ss:$8 sps:$4 sm:$0xff]   ;;  %v670_v11 = vld [vmem:[#allocation6 + $0x30] ss:$8 sps:$4 sm:$0xff]  }
  0x38   :  { %v680_v10 = vld [vmem:[#allocation8 + $0x78] sm:$0xff]   ;;  %v671_v13 = vld [vmem:[#allocation6 + $0x24] ss:$8 sps:$4 sm:$0xff]   ;;  %v682_v14 = vld [vmem:[#allocation8 + $0x70] sm:$0xff]   ;;  %v106_v47 = vshrl.u32 %v105_v46, 7  ;;  %s813_s26 = smov [#allocation11]  }
  0x39   :  { %v681_v12 = vld [vmem:[#allocation8 + $0x38] sm:$0xff]   ;;  %571 = vmatprep.subr.bf16.mxu1 %v680_v10  ;;  %v683_v15 = vld [vmem:[#allocation8 + $0x30] sm:$0xff]   ;;  %v673_v17 = vld [vmem:[#allocation6 + $0x20] ss:$8 sps:$4 sm:$0xff]  }
  0x3a   :  { %198 = vmatpush1.bf16.msra.mxu0 %v661_v4  ;;  %572 = vmatpush3.bf16.msra.mxu1 %v681_v12  ;;  %v674_v18 = vld [vmem:[#allocation6 + $0x14] ss:$8 sps:$4 sm:$0xff]   ;;  %v685_v19 = vld [vmem:[#allocation8 + $0x28] sm:$0xff]   ;;  %v686_v20 = vld [vmem:[#allocation8 + $0x60] sm:$0xff]   ;;  %v111_v48 = vsub.s32 1, %v106_v47  ;;  %v107_v49 = vsub.s32 0, %v106_v47 }
  0x3b   :  { %199 = vmatprep.subr.bf16.mxu0 %v662_v5  ;;  %573 = vmatprep.subr.bf16.mxu1 %v682_v14  ;;  %v676_v21 = vld [vmem:[#allocation6 + $0x10] ss:$8 sps:$4 sm:$0xff]   ;;  %v687_v22 = vld [vmem:[#allocation8 + $0x20] sm:$0xff]   ;;  %v692_v32 = vld [vmem:[#allocation8 + $0x48] sm:$0xff]  }
  0x3c   :  { %v677_v23 = vld [vmem:[#allocation6 + $0x4] ss:$8 sps:$4 sm:$0xff]   ;;  %v688_v24 = vld [vmem:[#allocation8 + $0x58] sm:$0xff]   ;;  %v679_v25 = vld [vmem:[#allocation6] ss:$8 sps:$4 sm:$0xff]  }
  0x3d   :  { %v875_v26 = vld [vmem:[#allocation3] sm:$0xff]  ;;  %v877_v27 = vld [vmem:[#allocation3 + $0x8] sm:$0xff]  ;;  %v693_v33 = vld [vmem:[#allocation8 + $0x8] sm:$0xff]  }
  0x3e   :  { %200 = vmatpush1.bf16.msra.mxu0 %v664_v6  ;;  %574 = vmatpush3.bf16.msra.mxu1 %v683_v15  ;;  %v689_v28 = vld [vmem:[#allocation8 + $0x18] sm:$0xff]   ;;  %v86_v29 = vpack.c.bf16 %v877_v27, %v875_v26  ;;  %v690_v30 = vld [vmem:[#allocation8 + $0x50] sm:$0xff]   ;;  %v694_v34 = vld [vmem:[#allocation8 + $0x40] sm:$0xff]  }
  0x3f   :  { %201 = vmatprep.subr.bf16.mxu0 %v665_v7  ;;  %575 = vmatprep.subr.bf16.mxu1 %v684_v16  ;;  %v691_v31 = vld [vmem:[#allocation8 + $0x10] sm:$0xff]   ;;  %v695_v35 = vld [vmem:[#allocation8] sm:$0xff]   ;;  %v437_v36 = vld [vmem:[#allocation9 + $0x78] sm:$0xff] }
  0x40   :  { %v436_v37 = vld [vmem:[#allocation9 + $0x70] sm:$0xff]  ;;  %v435_v38 = vld [vmem:[#allocation9 + $0x68] sm:$0xff]  ;;  %v434_v39 = vld [vmem:[#allocation9 + $0x60] sm:$0xff] }
  0x41   :  { %v433_v40 = vld [vmem:[#allocation9 + $0x58] sm:$0xff]  ;;  %v432_v41 = vld [vmem:[#allocation9 + $0x50] sm:$0xff]  ;;  %v431_v42 = vld [vmem:[#allocation9 + $0x48] sm:$0xff] }
  0x42   :  { %202 = vmatpush1.bf16.msra.mxu0 %v667_v8  ;;  %576 = vmatpush3.bf16.msra.mxu1 %v685_v19  ;;  %v430_v43 = vld [vmem:[#allocation9 + $0x40] sm:$0xff]  ;;  %v429_v44 = vld [vmem:[#allocation9 + $0x38] sm:$0xff]  ;;  %v428_v45 = vld [vmem:[#allocation9 + $0x30] sm:$0xff] }
  0x43   :  { %203 = vmatprep.subr.bf16.mxu0 %v668_v9  ;;  %577 = vmatprep.subr.bf16.mxu1 %v686_v20  ;;  %v103_v50 = vld [vmem:[%s900_s2] sm:$0x3]  ;;  %v427_v3 = vld [vmem:[#allocation9 + $0x28] sm:$0xff]  ;;  %v426_v4 = vld [vmem:[#allocation9 + $0x20] sm:$0xff]  ;;  %v439_v20 = vstv %s904_s6 }
  0x44   :  { %v112_v52 = vrot.slane %v103_v50, %v111_v48  ;;  %v108_v53 = vrot.slane %v103_v50, %v107_v49  ;;  %v425_v5 = vld [vmem:[#allocation9 + $0x18] sm:$0xff]  ;;  %v424_v6 = vld [vmem:[#allocation9 + $0x10] sm:$0xff]  ;;  %v423_v7 = vld [vmem:[#allocation9 + $0x8] sm:$0xff] }
  0x45   :  { %v422_v8 = vld [vmem:[#allocation9] sm:$0xff]  ;;  %v554_v10 = vld [vmem:[%s902_s4] ss:$0 sm:$0xff]  ;;  %s524_s4 = sshll.u32 %s813_s26, 4  ;;  %s525_s4 = int_to_ptr.vmem [resolvable:$true] %s524_s4 }
  0x46   :  { %204 = vmatpush1.bf16.msra.mxu0 %v670_v11  ;;  %578 = vmatpush3.bf16.msra.mxu1 %v687_v22  ;;  %s776_s27 = scalar_lea.vmem %s525_s4, 256  ;;  %p781_p7 = scmp.lt.s32.totalorder %s525_s4, %s525_s4 }
  0x47   :  { %205 = vmatprep.subr.bf16.mxu0 %v671_v13  ;;  %579 = vmatprep.subr.bf16.mxu1 %v688_v24  ;;  %p777_p6 = scmp.ne.s32.totalorder %s525_s4, %s776_s27  ;;  %p782_p8 = scmp.lt.s32.totalorder %s776_s27, %s776_s27 }
  0x49   :  { %p783_p9 = por %p782_p8, %p781_p7 }
  0x4a   :  { %206 = vmatpush1.bf16.msra.mxu0 %v673_v17  ;;  %580 = vmatpush3.bf16.msra.mxu1 %v689_v28 }
  0x4b   :  { %207 = vmatprep.subr.bf16.mxu0 %v674_v18  ;;  %581 = vmatprep.subr.bf16.mxu1 %v690_v30  ;;  %p784_p10 = pnand %p783_p9, %p777_p6 }
  0x4e   :  { %208 = vmatpush1.bf16.msra.mxu0 %v676_v21  ;;  %582 = vmatpush3.bf16.msra.mxu1 %v691_v31 }
  0x4f   :  { %209 = vmatprep.subr.bf16.mxu0 %v677_v23  ;;  %583 = vmatprep.subr.bf16.mxu1 %v692_v32 }
  0x52   :  { %210 = vmatpush1.bf16.msra.mxu0 %v679_v25  ;;  %584 = vmatpush3.bf16.msra.mxu1 %v693_v33 }
  0x53   :  { %585 = vmatprep.subr.bf16.mxu1 %v694_v34  ;;  %611 = vmatprep.subr.mxu0 %v437_v36 }
  0x55   :  { %228 = vmatmul.mubr.bf16.vlgmr.msra.gmra.mxu0 %v86_v29 }
  0x56   :  { %586 = vmatpush3.bf16.msra.mxu1 %v695_v35  ;;  %612 = vmatpush3.msra.mxu0 %v437_v36 }
  0x57   :  { %613 = vmatprep.subr.mxu0 %v436_v37 }
  0x58   :  { %614 = vmatpush3.msra.mxu0 %v436_v37 }
  0x59   :  { %615 = vmatprep.subr.mxu0 %v435_v38 }
  0x5a   :  { %616 = vmatpush3.msra.mxu0 %v435_v38 }
  0x5b   :  { %617 = vmatprep.subr.mxu0 %v434_v39 }
  0x5c   :  { %618 = vmatpush3.msra.mxu0 %v434_v39 }
  0x5d   :  { %619 = vmatprep.subr.mxu0 %v433_v40 }
  0x5e   :  { %620 = vmatpush3.msra.mxu0 %v433_v40 }
  0x5f   :  { %621 = vmatprep.subr.mxu0 %v432_v41 }
  0x60   :  { %622 = vmatpush3.msra.mxu0 %v432_v41 }
  0x61   :  { %623 = vmatprep.subr.mxu0 %v431_v42 }
  0x62   :  { %624 = vmatpush3.msra.mxu0 %v431_v42 }
  0x63   :  { %625 = vmatprep.subr.mxu0 %v430_v43 }
  0x64   :  { %626 = vmatpush3.msra.mxu0 %v430_v43 }
  0x65   :  { %627 = vmatprep.subr.mxu0 %v429_v44 }
  0x66   :  { %628 = vmatpush3.msra.mxu0 %v429_v44 }
  0x67   :  { %629 = vmatprep.subr.mxu0 %v428_v45 }
  0x68   :  { %630 = vmatpush3.msra.mxu0 %v428_v45 }
  0x69   :  { %631 = vmatprep.subr.mxu0 %v427_v3 }
  0x6a   :  { %632 = vmatpush3.msra.mxu0 %v427_v3 }
  0x6b   :  { %633 = vmatprep.subr.mxu0 %v426_v4 }
  0x6c   :  { %634 = vmatpush3.msra.mxu0 %v426_v4 }
  0x6d   :  { %635 = vmatprep.subr.mxu0 %v425_v5 }
  0x6e   :  { %636 = vmatpush3.msra.mxu0 %v425_v5 }
  0x6f   :  { %637 = vmatprep.subr.mxu0 %v424_v6 }
  0x70   :  { %638 = vmatpush3.msra.mxu0 %v424_v6 }
  0x71   :  { %639 = vmatprep.subr.mxu0 %v423_v7 }
  0x72   :  { %640 = vmatpush3.msra.mxu0 %v423_v7 }
  0x73   :  { %641 = vmatprep.subr.mxu0 %v422_v8 }
  0x74   :  { %642 = vmatpush3.msra.mxu0 %v422_v8 }
 0x115   :  { %v229_v51 = vpop.f32.mrf.mxu0 }
 0x116   :  { %v230_v58 = vadd.f32 %v229_v51, %v108_v53 }
 0x117   :  { %v231_v54 = vpop.f32.mrf.mxu0 }
 0x118   :  { %v232_v56 = vadd.f32 %v231_v54, %v112_v52  ;;  %v238_v0 = vmax.f32 %v230_v58, 0.0 }
 0x119   :  { %v233_v55 = vpop.f32.mrf.mxu0 }
 0x11a   :  { %v234_v57 = vadd.f32 %v233_v55, %v108_v53  ;;  %v239_v62 = vmax.f32 %v232_v56, 0.0 }
 0x11b   :  { %v235_v59 = vpop.f32.mrf.mxu0 }
 0x11c   :  { %v236_v60 = vadd.f32 %v235_v59, %v112_v52  ;;  %v240_v61 = vmax.f32 %v234_v57, 0.0 }
 0x11e   :  { %v241_v63 = vmax.f32 %v236_v60, 0.0  ;;  %v242_v2 = vpack.c.bf16 %v240_v61, %v238_v0 }
 0x120   :  { %v243_v1 = vpack.c.bf16 %v241_v63, %v239_v62 }
 0x122   :  { %411 = vmatprep.mubr.bf16.mxu1 %v243_v1 }
 0x123   :  { %412 = vmatmul.mubr.bf16.vlgmr.msra.gmra.mxu1 %v242_v2 }
 0x1e3   :  { %v587_v9 = vpop.f32.mrf.mxu1 }
 0x1e5   :  { %v588_v11 = vpop.f32.mrf.mxu1 }
 0x1e6   :  { %v589_v12 = vadd.f32 %v588_v11, %v587_v9 }
 0x1e7   :  { %v590_v13 = vpop.f32.mrf.mxu1 }
 0x1e8   :  { %v414_v14 = vadd.f32 %v589_v12, %v554_v10 }
 0x1e9   :  { %v591_v15 = vpop.f32.mrf.mxu1 }
 0x1ea   :  { %v420_v16 = vmax.f32 %v414_v14, 0.0  ;;  %v592_v17 = vadd.f32 %v591_v15, %v590_v13 }
 0x1ec   :  { %v417_v18 = vadd.f32 %v592_v17, %v554_v10  ;;  %643 = vmatprep.mubr.f32.mxu0 %v420_v16 }
 0x1ee   :  { %v421_v19 = vmax.f32 %v417_v18, 0.0 }
 0x1f0   :  { %644 = vmatmul.mubr.f32.vlgmr.msra.gmra.mxu0 %v421_v19 }
 0x2b0   :  { %v645_v21 = vpop.f32.mrf.mxu0 }
 0x2b1   :  { %v512_v22 = vadd.f32 %v645_v21, %v439_v20 }
 0x2b2   :  { %v506_v23 = vpop.f32.mrf.mxu0 }
 0x2b3   :  { %v516_v24 = vmul.f32 %v512_v22, %v877_v27  ;;  %v507_v25 = vadd.f32 %v506_v23, %v439_v20 }
 0x2b5   :  { %518 = vst [vmem:[#allocation11 + $0x8] sm:$0xff] %v516_v24  ;;  %v515_v28 = vmul.f32 %v507_v25, %v875_v26 }
 0x2b7   :  { %517 = vst [vmem:[#allocation11] sm:$0xff] %v515_v28 }
 0x2b8   :  { %787 = shalt.err (!%p784_p10)
}
 0x2b9   :  { %530 = dma.vmem_to_hbm [thread:$0]  %s525_s4, 256, %s905_s7, [#allocation5], %s806_s29, %s806_s29, %s807_s30  }
 0x2ba   :  { %802 = dma.done.wait [#allocation5], 256  }
 0x2bb   :  { %803 = vsyncadd [#allocation5], 4294967040 }
 0x2bc   :  { %534 = vsyncpa [#allocation4], 1 }
 0x2bd   :  { %535 = vsyncpa [#allocation7], 1 }
 0x2be   :  { %536 = vsyncpa [#allocation10], 1 }
 0x2bf   :  { %537 = vsyncpa [#allocation5], 1 }

</bundles_post_ra>
